<compile_context>
chip_gen: v7x
topology: tpu7x:2x2x1
jax: 0.10.0
libtpu: 0.0.40
codegen_flags: <defaults>
</compile_context>

<pallas_src>
import functools

import jax
import jax.numpy as jnp
from jax import lax
from jax.experimental import pallas as pl
from jax.experimental.pallas import tpu as pltpu

LANE = 128  # lane-dense output slab width (mu lanes 0..C-1, kappa lane C)


def encoder_kernel(x_ref, wih_ref, b_ref, whh_ref, wf_ref, bf_ref, out_ref,
                   hbuf_ref, *, hidden, num_c):
    """LSTM recurrence (state in vregs) + deferred fused (mu|kappa) projection.

    x_ref   : (T, BB, 1)  raw input, time-major
    wih_ref : (1, 4H)     input->gates weight row   (g-gate cols pre-scaled x2)
    b_ref   : (1, 4H)     b_ih + b_hh               (g-gate entries pre-scaled x2)
    whh_ref : (H, 4H)     recurrent weight, right-multiply layout (g cols x2)
    wf_ref  : (T*H, 128)  fused [W_mu^T | W_kappa^T | zero-pad] weight
    bf_ref  : (1, 128)    fused [b_mu | b_kappa | zero-pad] bias
    out_ref : (BB, 128)   lane-dense output slab
    hbuf_ref: (BB, T*H)   VMEM staging of every h_t for the deferred projection
    """
    T = x_ref.shape[0]
    BB = x_ref.shape[1]
    H = hidden

    x_all = x_ref[...]              # (T, BB, 1) single prologue load
    wih = wih_ref[...]              # (1, 4H)
    b = b_ref[...]                  # (1, 4H)
    whh = whh_ref[...]              # (H, 4H)   loaded once, reused every step

    h = jnp.zeros((BB, H), jnp.float32)
    c = jnp.zeros((BB, H), jnp.float32)

    # Static unroll: T is small & static; h/c live in vregs the whole time.
    for t in range(T):
        # Input-gate contribution (independent of h -> off the critical path).
        gx = x_all[t] * wih + b                                   # (BB, 4H)
        gates = gx + jnp.dot(h, whh, preferred_element_type=jnp.float32)
        # One full-width EUP push. PyTorch gate order: i, f, g, o. The g-gate
        # pre-activation was scaled by 2 in prepare_params so that
        # tanh(z) == 2*sigmoid(2z) - 1 reuses the same sigmoid result (VPU fixup).
        sig = jax.nn.sigmoid(gates)
        i_g = sig[:, 0 * H:1 * H]
        f_g = sig[:, 1 * H:2 * H]
        g_g = 2.0 * sig[:, 2 * H:3 * H] - 1.0
        o_g = sig[:, 3 * H:4 * H]
        c = f_g * c + i_g * g_g
        h = o_g * jnp.tanh(c)
        # Stage h_t for the deferred projection: store only, no read-modify-write.
        hbuf_ref[:, t * H:(t + 1) * H] = h

    # Epilogue: single K = T*H matmul for the fused (mu | kappa) projection.
    raw = jnp.dot(hbuf_ref[...], wf_ref[...],
                  preferred_element_type=jnp.float32) + bf_ref[...]   # (BB, 128)

    lane = lax.broadcasted_iota(jnp.int32, raw.shape, 1)
    is_mu = lane < num_c
    mu_masked = jnp.where(is_mu, raw, 0.0)
    ssq = jnp.sum(mu_masked * mu_masked, axis=1, keepdims=True)
    mu_out = mu_masked * lax.rsqrt(jnp.maximum(ssq, 1e-30))      # guarded norm
    kap_out = jax.nn.softplus(raw) + 1.0
    out_ref[...] = jnp.where(is_mu, mu_out,
                             jnp.where(lane == num_c, kap_out, 0.0))


def prepare_params(params, seq_len):
    """One-time parameter packing (hoisted out of the per-call wrapper)."""
    f32 = jnp.float32
    T = seq_len
    H = params["whh"].shape[1]
    C = params["wmu"].shape[0]
    assert C + 1 <= LANE, "output slab too narrow for mu+kappa"

    # Scale the g-gate rows by 2 so tanh can be recovered from the sigmoid push.
    gscale = jnp.ones((4 * H, 1), f32).at[2 * H:3 * H, :].set(2.0)
    wih = params["wih"].astype(f32) * gscale                      # (4H, 1)
    whh = params["whh"].astype(f32) * gscale                      # (4H, H)
    b = (params["bih"] + params["bhh"]).astype(f32) * gscale[:, 0]

    # Fused, zero-padded (mu | kappa) weight and bias.
    wf = jnp.zeros((T * H, LANE), f32)
    wf = wf.at[:, :C].set(params["wmu"].T.astype(f32))
    wf = wf.at[:, C:C + 1].set(params["wk"].T.astype(f32))
    bf = jnp.zeros((1, LANE), f32)
    bf = bf.at[0, :C].set(params["bmu"].astype(f32))
    bf = bf.at[0, C].set(params["bk"].astype(f32)[0])

    return {
        "wih": wih.T,                     # (1, 4H)
        "b": b.reshape(1, 4 * H),         # (1, 4H)
        "whh": whh.T,                     # (H, 4H)
        "wf": wf,                         # (T*H, 128)
        "bf": bf,                         # (1, 128)
    }


@functools.partial(jax.jit, static_argnames=("num_c",))
def encoder_forward(x, packed, *, num_c):
    """x: (B, T, 1) float32 (batch_first, input_size=1). Returns (mu, kappa)."""
    B, T, _ = x.shape
    H = packed["whh"].shape[0]

    # Batch block: multiple of 8 sublanes, capped at 128 MXU rows per block.
    BB = min(((B + 7) // 8) * 8, 128)
    Bp = ((B + BB - 1) // BB) * BB
    nb = Bp // BB

    x_tm = jnp.transpose(x, (1, 0, 2)).astype(jnp.float32)        # (T, B, 1)
    if Bp != B:
        x_tm = jnp.pad(x_tm, ((0, 0), (0, Bp - B), (0, 0)))

    out = pl.pallas_call(
        functools.partial(encoder_kernel, hidden=H, num_c=num_c),
        out_shape=jax.ShapeDtypeStruct((Bp, LANE), jnp.float32),
        grid=(nb,),
        in_specs=[
            pl.BlockSpec((T, BB, 1), lambda i: (0, i, 0)),        # x (time-major)
            pl.BlockSpec((1, 4 * H), lambda i: (0, 0)),           # wih row
            pl.BlockSpec((1, 4 * H), lambda i: (0, 0)),           # bias row
            pl.BlockSpec((H, 4 * H), lambda i: (0, 0)),           # whh
            pl.BlockSpec((T * H, LANE), lambda i: (0, 0)),        # fused proj W
            pl.BlockSpec((1, LANE), lambda i: (0, 0)),            # fused proj b
        ],
        out_specs=pl.BlockSpec((BB, LANE), lambda i: (i, 0)),
        scratch_shapes=[pltpu.VMEM((BB, T * H), jnp.float32)],    # h_t staging
        compiler_params=pltpu.CompilerParams(
            dimension_semantics=("parallel",)),                   # 2nd TC on v7x
    )(x_tm, packed["wih"], packed["b"], packed["whh"],
      packed["wf"], packed["bf"])

    mu = out[:B, :num_c]
    kappa = out[:B, num_c:num_c + 1]
    return mu, kappa


def encoder_ref(x, p):
    """Pure-JAX reference matching the PyTorch forward (deterministic part)."""
    B, T, _ = x.shape
    H = p["whh"].shape[1]
    h = jnp.zeros((B, H), jnp.float32)
    c = jnp.zeros((B, H), jnp.float32)
    outs = []
    for t in range(T):
        g = x[:, t, :] @ p["wih"].T + h @ p["whh"].T + p["bih"] + p["bhh"]
        i = jax.nn.sigmoid(g[:, :H])
        f = jax.nn.sigmoid(g[:, H:2 * H])
        gg = jnp.tanh(g[:, 2 * H:3 * H])
        o = jax.nn.sigmoid(g[:, 3 * H:4 * H])
        c = f * c + i * gg
        h = o * jnp.tanh(c)
        outs.append(h)
    h_end = jnp.stack(outs, axis=1).reshape(B, T * H)   # flatten(output, 1, 2)
    mu = h_end @ p["wmu"].T + p["bmu"]
    mu = mu / jnp.linalg.norm(mu, axis=1, keepdims=True)
    kappa = jax.nn.softplus(h_end @ p["wk"].T + p["bk"]) + 1.0
    return mu, kappa


if __name__ == "__main__":
    # Small shapes consistent with the module:
    #   input_channels (= LSTM seq len) T = 8, hidden_size H = 32,
    #   output_channels C = 16, batch B = 2, LSTM input_size = 1.
    B, T, H, C = 2, 8, 32, 16
    key = jax.random.PRNGKey(0)
    ks = jax.random.split(key, 9)
    scale = 0.1
    params = {
        "wih": jax.random.normal(ks[0], (4 * H, 1), jnp.float32) * scale,
        "whh": jax.random.normal(ks[1], (4 * H, H), jnp.float32) * scale,
        "bih": jax.random.normal(ks[2], (4 * H,), jnp.float32) * scale,
        "bhh": jax.random.normal(ks[3], (4 * H,), jnp.float32) * scale,
        "wmu": jax.random.normal(ks[4], (C, T * H), jnp.float32) * scale,
        "bmu": jax.random.normal(ks[5], (C,), jnp.float32) * scale,
        "wk": jax.random.normal(ks[6], (1, T * H), jnp.float32) * scale,
        "bk": jax.random.normal(ks[7], (1,), jnp.float32) * scale,
    }
    x = jax.random.normal(ks[8], (B, T, 1), jnp.float32)

    packed = prepare_params(params, T)          # one-time weight packing
    mu, kappa = jax.block_until_ready(encoder_forward(x, packed, num_c=C))
    mu_ref, kappa_ref = encoder_ref(x, params)

    assert jnp.allclose(mu, mu_ref, atol=1e-4, rtol=1e-4), "mu mismatch"
    assert jnp.allclose(kappa, kappa_ref, atol=1e-4, rtol=1e-4), "kappa mismatch"
    print("KERNEL_OK")
</pallas_src>

<mosaic_0001>
module attributes {stable_mosaic.version = 11 : i64} {
  func.func @encoder_kernel(%arg0: i32, %arg1: memref<8x8x1xf32, #tpu.memory_space<vmem>>, %arg2: memref<1x128xf32, #tpu.memory_space<vmem>>, %arg3: memref<1x128xf32, #tpu.memory_space<vmem>>, %arg4: memref<32x128xf32, #tpu.memory_space<vmem>>, %arg5: memref<256x128xf32, #tpu.memory_space<vmem>>, %arg6: memref<1x128xf32, #tpu.memory_space<vmem>>, %arg7: memref<8x128xf32, #tpu.memory_space<vmem>>, %arg8: memref<8x256xf32, #tpu.memory_space<vmem>>) attributes {dimension_semantics = [#tpu.dimension_semantics<parallel>], iteration_bounds = array<i64: 1>, scalar_prefetch = 0 : i64, scratch_operands = 1 : i64, tpu.core_type = #tpu.core_type<tc>, window_params = [{transform_indices = @transform_0, window_bounds = array<i64: 8, 8, 1>}, {pipeline_mode = #tpu.pipeline_mode<synchronous>, transform_indices = @transform_1, window_bounds = array<i64: 1, 128>}, {pipeline_mode = #tpu.pipeline_mode<synchronous>, transform_indices = @transform_2, window_bounds = array<i64: 1, 128>}, {pipeline_mode = #tpu.pipeline_mode<synchronous>, transform_indices = @transform_3, window_bounds = array<i64: 32, 128>}, {pipeline_mode = #tpu.pipeline_mode<synchronous>, transform_indices = @transform_4, window_bounds = array<i64: 256, 128>}, {pipeline_mode = #tpu.pipeline_mode<synchronous>, transform_indices = @transform_5, window_bounds = array<i64: 1, 128>}, {transform_indices = @transform_6, window_bounds = array<i64: 8, 128>}]} {
    %c0 = arith.constant 0 : index
    %c0_0 = arith.constant 0 : index
    %c0_1 = arith.constant 0 : index
    %0 = vector.load %arg1[%c0, %c0_0, %c0_1] : memref<8x8x1xf32, #tpu.memory_space<vmem>>, vector<8x8x1xf32>
    %c0_2 = arith.constant 0 : index
    %c0_3 = arith.constant 0 : index
    %1 = vector.load %arg2[%c0_2, %c0_3] : memref<1x128xf32, #tpu.memory_space<vmem>>, vector<1x128xf32>
    %c0_4 = arith.constant 0 : index
    %c0_5 = arith.constant 0 : index
    %2 = vector.load %arg3[%c0_4, %c0_5] : memref<1x128xf32, #tpu.memory_space<vmem>>, vector<1x128xf32>
    %c0_6 = arith.constant 0 : index
    %c0_7 = arith.constant 0 : index
    %3 = vector.load %arg4[%c0_6, %c0_7] : memref<32x128xf32, #tpu.memory_space<vmem>>, vector<32x128xf32>
    %cst = arith.constant 0.000000e+00 : f32
    %4 = vector.broadcast %cst : f32 to vector<8x32xf32>
    %cst_8 = arith.constant 0.000000e+00 : f32
    %5 = vector.broadcast %cst_8 : f32 to vector<8x32xf32>
    %6 = vector.extract_strided_slice %0 {offsets = [0, 0, 0], sizes = [1, 8, 1], strides = [1, 1, 1]} : vector<8x8x1xf32> to vector<1x8x1xf32>
    %7 = vector.shape_cast %6 : vector<1x8x1xf32> to vector<8x1xf32>
    %8 = vector.broadcast %7 : vector<8x1xf32> to vector<8x128xf32>
    %9 = vector.broadcast %1 : vector<1x128xf32> to vector<8x128xf32>
    %10 = arith.mulf %8, %9 : vector<8x128xf32>
    %11 = vector.broadcast %2 : vector<1x128xf32> to vector<8x128xf32>
    %12 = arith.addf %10, %11 : vector<8x128xf32>
    %cst_9 = arith.constant dense<0.000000e+00> : vector<8x128xf32>
    %13 = tpu.matmul %4, %3, %cst_9 {dimension_numbers = #tpu.dot_dimension_numbers<[1], [0], [0], [1], [0, 0, 1, 1], [], []>} : vector<8x32xf32>, vector<32x128xf32>, vector<8x128xf32> -> vector<8x128xf32>
    %14 = arith.addf %12, %13 : vector<8x128xf32>
    %15 = arith.negf %14 : vector<8x128xf32>
    %16 = math.exp %15 : vector<8x128xf32>
    %cst_10 = arith.constant 1.000000e+00 : f32
    %17 = vector.broadcast %cst_10 : f32 to vector<8x128xf32>
    %18 = arith.addf %17, %16 : vector<8x128xf32>
    %19 = arith.divf %17, %18 : vector<8x128xf32>
    %20 = vector.extract_strided_slice %19 {offsets = [0, 0], sizes = [8, 32], strides = [1, 1]} : vector<8x128xf32> to vector<8x32xf32>
    %21 = vector.extract_strided_slice %19 {offsets = [0, 32], sizes = [8, 32], strides = [1, 1]} : vector<8x128xf32> to vector<8x32xf32>
    %22 = vector.extract_strided_slice %19 {offsets = [0, 64], sizes = [8, 32], strides = [1, 1]} : vector<8x128xf32> to vector<8x32xf32>
    %cst_11 = arith.constant 2.000000e+00 : f32
    %23 = vector.broadcast %cst_11 : f32 to vector<8x32xf32>
    %24 = arith.mulf %23, %22 : vector<8x32xf32>
    %cst_12 = arith.constant 1.000000e+00 : f32
    %25 = vector.broadcast %cst_12 : f32 to vector<8x32xf32>
    %26 = arith.subf %24, %25 : vector<8x32xf32>
    %27 = vector.extract_strided_slice %19 {offsets = [0, 96], sizes = [8, 32], strides = [1, 1]} : vector<8x128xf32> to vector<8x32xf32>
    %28 = arith.mulf %21, %5 : vector<8x32xf32>
    %29 = arith.mulf %20, %26 : vector<8x32xf32>
    %30 = arith.addf %28, %29 : vector<8x32xf32>
    %31 = math.tanh %30 : vector<8x32xf32>
    %32 = arith.mulf %27, %31 : vector<8x32xf32>
    %c0_13 = arith.constant 0 : index
    %c0_14 = arith.constant 0 : index
    %33 = vector.load %arg8[%c0_13, %c0_14] : memref<8x256xf32, #tpu.memory_space<vmem>>, vector<8x32xf32>
    tpu.vector_store %arg8[%c0_13, %c0_14], %32 {strides = array<i32>} : memref<8x256xf32, #tpu.memory_space<vmem>>, vector<8x32xf32>,
    %34 = vector.extract_strided_slice %0 {offsets = [1, 0, 0], sizes = [1, 8, 1], strides = [1, 1, 1]} : vector<8x8x1xf32> to vector<1x8x1xf32>
    %35 = vector.shape_cast %34 : vector<1x8x1xf32> to vector<8x1xf32>
    %36 = vector.broadcast %35 : vector<8x1xf32> to vector<8x128xf32>
    %37 = vector.broadcast %1 : vector<1x128xf32> to vector<8x128xf32>
    %38 = arith.mulf %36, %37 : vector<8x128xf32>
    %39 = vector.broadcast %2 : vector<1x128xf32> to vector<8x128xf32>
    %40 = arith.addf %38, %39 : vector<8x128xf32>
    %cst_15 = arith.constant dense<0.000000e+00> : vector<8x128xf32>
    %41 = tpu.matmul %32, %3, %cst_15 {dimension_numbers = #tpu.dot_dimension_numbers<[1], [0], [0], [1], [0, 0, 1, 1], [], []>} : vector<8x32xf32>, vector<32x128xf32>, vector<8x128xf32> -> vector<8x128xf32>
    %42 = arith.addf %40, %41 : vector<8x128xf32>
    %43 = arith.negf %42 : vector<8x128xf32>
    %44 = math.exp %43 : vector<8x128xf32>
    %cst_16 = arith.constant 1.000000e+00 : f32
    %45 = vector.broadcast %cst_16 : f32 to vector<8x128xf32>
    %46 = arith.addf %45, %44 : vector<8x128xf32>
    %47 = arith.divf %45, %46 : vector<8x128xf32>
    %48 = vector.extract_strided_slice %47 {offsets = [0, 0], sizes = [8, 32], strides = [1, 1]} : vector<8x128xf32> to vector<8x32xf32>
    %49 = vector.extract_strided_slice %47 {offsets = [0, 32], sizes = [8, 32], strides = [1, 1]} : vector<8x128xf32> to vector<8x32xf32>
    %50 = vector.extract_strided_slice %47 {offsets = [0, 64], sizes = [8, 32], strides = [1, 1]} : vector<8x128xf32> to vector<8x32xf32>
    %cst_17 = arith.constant 2.000000e+00 : f32
    %51 = vector.broadcast %cst_17 : f32 to vector<8x32xf32>
    %52 = arith.mulf %51, %50 : vector<8x32xf32>
    %cst_18 = arith.constant 1.000000e+00 : f32
    %53 = vector.broadcast %cst_18 : f32 to vector<8x32xf32>
    %54 = arith.subf %52, %53 : vector<8x32xf32>
    %55 = vector.extract_strided_slice %47 {offsets = [0, 96], sizes = [8, 32], strides = [1, 1]} : vector<8x128xf32> to vector<8x32xf32>
    %56 = arith.mulf %49, %30 : vector<8x32xf32>
    %57 = arith.mulf %48, %54 : vector<8x32xf32>
    %58 = arith.addf %56, %57 : vector<8x32xf32>
    %59 = math.tanh %58 : vector<8x32xf32>
    %60 = arith.mulf %55, %59 : vector<8x32xf32>
    %c0_19 = arith.constant 0 : index
    %c32 = arith.constant 32 : index
    %61 = vector.load %arg8[%c0_19, %c32] : memref<8x256xf32, #tpu.memory_space<vmem>>, vector<8x32xf32>
    tpu.vector_store %arg8[%c0_19, %c32], %60 {strides = array<i32>} : memref<8x256xf32, #tpu.memory_space<vmem>>, vector<8x32xf32>,
    %62 = vector.extract_strided_slice %0 {offsets = [2, 0, 0], sizes = [1, 8, 1], strides = [1, 1, 1]} : vector<8x8x1xf32> to vector<1x8x1xf32>
    %63 = vector.shape_cast %62 : vector<1x8x1xf32> to vector<8x1xf32>
    %64 = vector.broadcast %63 : vector<8x1xf32> to vector<8x128xf32>
    %65 = vector.broadcast %1 : vector<1x128xf32> to vector<8x128xf32>
    %66 = arith.mulf %64, %65 : vector<8x128xf32>
    %67 = vector.broadcast %2 : vector<1x128xf32> to vector<8x128xf32>
    %68 = arith.addf %66, %67 : vector<8x128xf32>
    %cst_20 = arith.constant dense<0.000000e+00> : vector<8x128xf32>
    %69 = tpu.matmul %60, %3, %cst_20 {dimension_numbers = #tpu.dot_dimension_numbers<[1], [0], [0], [1], [0, 0, 1, 1], [], []>} : vector<8x32xf32>, vector<32x128xf32>, vector<8x128xf32> -> vector<8x128xf32>
    %70 = arith.addf %68, %69 : vector<8x128xf32>
    %71 = arith.negf %70 : vector<8x128xf32>
    %72 = math.exp %71 : vector<8x128xf32>
    %cst_21 = arith.constant 1.000000e+00 : f32
    %73 = vector.broadcast %cst_21 : f32 to vector<8x128xf32>
    %74 = arith.addf %73, %72 : vector<8x128xf32>
    %75 = arith.divf %73, %74 : vector<8x128xf32>
    %76 = vector.extract_strided_slice %75 {offsets = [0, 0], sizes = [8, 32], strides = [1, 1]} : vector<8x128xf32> to vector<8x32xf32>
    %77 = vector.extract_strided_slice %75 {offsets = [0, 32], sizes = [8, 32], strides = [1, 1]} : vector<8x128xf32> to vector<8x32xf32>
    %78 = vector.extract_strided_slice %75 {offsets = [0, 64], sizes = [8, 32], strides = [1, 1]} : vector<8x128xf32> to vector<8x32xf32>
    %cst_22 = arith.constant 2.000000e+00 : f32
    %79 = vector.broadcast %cst_22 : f32 to vector<8x32xf32>
    %80 = arith.mulf %79, %78 : vector<8x32xf32>
    %cst_23 = arith.constant 1.000000e+00 : f32
    %81 = vector.broadcast %cst_23 : f32 to vector<8x32xf32>
    %82 = arith.subf %80, %81 : vector<8x32xf32>
    %83 = vector.extract_strided_slice %75 {offsets = [0, 96], sizes = [8, 32], strides = [1, 1]} : vector<8x128xf32> to vector<8x32xf32>
    %84 = arith.mulf %77, %58 : vector<8x32xf32>
    %85 = arith.mulf %76, %82 : vector<8x32xf32>
    %86 = arith.addf %84, %85 : vector<8x32xf32>
    %87 = math.tanh %86 : vector<8x32xf32>
    %88 = arith.mulf %83, %87 : vector<8x32xf32>
    %c0_24 = arith.constant 0 : index
    %c64 = arith.constant 64 : index
    %89 = vector.load %arg8[%c0_24, %c64] : memref<8x256xf32, #tpu.memory_space<vmem>>, vector<8x32xf32>
    tpu.vector_store %arg8[%c0_24, %c64], %88 {strides = array<i32>} : memref<8x256xf32, #tpu.memory_space<vmem>>, vector<8x32xf32>,
    %90 = vector.extract_strided_slice %0 {offsets = [3, 0, 0], sizes = [1, 8, 1], strides = [1, 1, 1]} : vector<8x8x1xf32> to vector<1x8x1xf32>
    %91 = vector.shape_cast %90 : vector<1x8x1xf32> to vector<8x1xf32>
    %92 = vector.broadcast %91 : vector<8x1xf32> to vector<8x128xf32>
    %93 = vector.broadcast %1 : vector<1x128xf32> to vector<8x128xf32>
    %94 = arith.mulf %92, %93 : vector<8x128xf32>
    %95 = vector.broadcast %2 : vector<1x128xf32> to vector<8x128xf32>
    %96 = arith.addf %94, %95 : vector<8x128xf32>
    %cst_25 = arith.constant dense<0.000000e+00> : vector<8x128xf32>
    %97 = tpu.matmul %88, %3, %cst_25 {dimension_numbers = #tpu.dot_dimension_numbers<[1], [0], [0], [1], [0, 0, 1, 1], [], []>} : vector<8x32xf32>, vector<32x128xf32>, vector<8x128xf32> -> vector<8x128xf32>
    %98 = arith.addf %96, %97 : vector<8x128xf32>
    %99 = arith.negf %98 : vector<8x128xf32>
    %100 = math.exp %99 : vector<8x128xf32>
    %cst_26 = arith.constant 1.000000e+00 : f32
    %101 = vector.broadcast %cst_26 : f32 to vector<8x128xf32>
    %102 = arith.addf %101, %100 : vector<8x128xf32>
    %103 = arith.divf %101, %102 : vector<8x128xf32>
    %104 = vector.extract_strided_slice %103 {offsets = [0, 0], sizes = [8, 32], strides = [1, 1]} : vector<8x128xf32> to vector<8x32xf32>
    %105 = vector.extract_strided_slice %103 {offsets = [0, 32], sizes = [8, 32], strides = [1, 1]} : vector<8x128xf32> to vector<8x32xf32>
    %106 = vector.extract_strided_slice %103 {offsets = [0, 64], sizes = [8, 32], strides = [1, 1]} : vector<8x128xf32> to vector<8x32xf32>
    %cst_27 = arith.constant 2.000000e+00 : f32
    %107 = vector.broadcast %cst_27 : f32 to vector<8x32xf32>
    %108 = arith.mulf %107, %106 : vector<8x32xf32>
    %cst_28 = arith.constant 1.000000e+00 : f32
    %109 = vector.broadcast %cst_28 : f32 to vector<8x32xf32>
    %110 = arith.subf %108, %109 : vector<8x32xf32>
    %111 = vector.extract_strided_slice %103 {offsets = [0, 96], sizes = [8, 32], strides = [1, 1]} : vector<8x128xf32> to vector<8x32xf32>
    %112 = arith.mulf %105, %86 : vector<8x32xf32>
    %113 = arith.mulf %104, %110 : vector<8x32xf32>
    %114 = arith.addf %112, %113 : vector<8x32xf32>
    %115 = math.tanh %114 : vector<8x32xf32>
    %116 = arith.mulf %111, %115 : vector<8x32xf32>
    %c0_29 = arith.constant 0 : index
    %c96 = arith.constant 96 : index
    %117 = vector.load %arg8[%c0_29, %c96] : memref<8x256xf32, #tpu.memory_space<vmem>>, vector<8x32xf32>
    tpu.vector_store %arg8[%c0_29, %c96], %116 {strides = array<i32>} : memref<8x256xf32, #tpu.memory_space<vmem>>, vector<8x32xf32>,
    %118 = vector.extract_strided_slice %0 {offsets = [4, 0, 0], sizes = [1, 8, 1], strides = [1, 1, 1]} : vector<8x8x1xf32> to vector<1x8x1xf32>
    %119 = vector.shape_cast %118 : vector<1x8x1xf32> to vector<8x1xf32>
    %120 = vector.broadcast %119 : vector<8x1xf32> to vector<8x128xf32>
    %121 = vector.broadcast %1 : vector<1x128xf32> to vector<8x128xf32>
    %122 = arith.mulf %120, %121 : vector<8x128xf32>
    %123 = vector.broadcast %2 : vector<1x128xf32> to vector<8x128xf32>
    %124 = arith.addf %122, %123 : vector<8x128xf32>
    %cst_30 = arith.constant dense<0.000000e+00> : vector<8x128xf32>
    %125 = tpu.matmul %116, %3, %cst_30 {dimension_numbers = #tpu.dot_dimension_numbers<[1], [0], [0], [1], [0, 0, 1, 1], [], []>} : vector<8x32xf32>, vector<32x128xf32>, vector<8x128xf32> -> vector<8x128xf32>
    %126 = arith.addf %124, %125 : vector<8x128xf32>
    %127 = arith.negf %126 : vector<8x128xf32>
    %128 = math.exp %127 : vector<8x128xf32>
    %cst_31 = arith.constant 1.000000e+00 : f32
    %129 = vector.broadcast %cst_31 : f32 to vector<8x128xf32>
    %130 = arith.addf %129, %128 : vector<8x128xf32>
    %131 = arith.divf %129, %130 : vector<8x128xf32>
    %132 = vector.extract_strided_slice %131 {offsets = [0, 0], sizes = [8, 32], strides = [1, 1]} : vector<8x128xf32> to vector<8x32xf32>
    %133 = vector.extract_strided_slice %131 {offsets = [0, 32], sizes = [8, 32], strides = [1, 1]} : vector<8x128xf32> to vector<8x32xf32>
    %134 = vector.extract_strided_slice %131 {offsets = [0, 64], sizes = [8, 32], strides = [1, 1]} : vector<8x128xf32> to vector<8x32xf32>
    %cst_32 = arith.constant 2.000000e+00 : f32
    %135 = vector.broadcast %cst_32 : f32 to vector<8x32xf32>
    %136 = arith.mulf %135, %134 : vector<8x32xf32>
    %cst_33 = arith.constant 1.000000e+00 : f32
    %137 = vector.broadcast %cst_33 : f32 to vector<8x32xf32>
    %138 = arith.subf %136, %137 : vector<8x32xf32>
    %139 = vector.extract_strided_slice %131 {offsets = [0, 96], sizes = [8, 32], strides = [1, 1]} : vector<8x128xf32> to vector<8x32xf32>
    %140 = arith.mulf %133, %114 : vector<8x32xf32>
    %141 = arith.mulf %132, %138 : vector<8x32xf32>
    %142 = arith.addf %140, %141 : vector<8x32xf32>
    %143 = math.tanh %142 : vector<8x32xf32>
    %144 = arith.mulf %139, %143 : vector<8x32xf32>
    %c0_34 = arith.constant 0 : index
    %c128 = arith.constant 128 : index
    %145 = vector.load %arg8[%c0_34, %c128] : memref<8x256xf32, #tpu.memory_space<vmem>>, vector<8x32xf32>
    tpu.vector_store %arg8[%c0_34, %c128], %144 {strides = array<i32>} : memref<8x256xf32, #tpu.memory_space<vmem>>, vector<8x32xf32>,
    %146 = vector.extract_strided_slice %0 {offsets = [5, 0, 0], sizes = [1, 8, 1], strides = [1, 1, 1]} : vector<8x8x1xf32> to vector<1x8x1xf32>
    %147 = vector.shape_cast %146 : vector<1x8x1xf32> to vector<8x1xf32>
    %148 = vector.broadcast %147 : vector<8x1xf32> to vector<8x128xf32>
    %149 = vector.broadcast %1 : vector<1x128xf32> to vector<8x128xf32>
    %150 = arith.mulf %148, %149 : vector<8x128xf32>
    %151 = vector.broadcast %2 : vector<1x128xf32> to vector<8x128xf32>
    %152 = arith.addf %150, %151 : vector<8x128xf32>
    %cst_35 = arith.constant dense<0.000000e+00> : vector<8x128xf32>
    %153 = tpu.matmul %144, %3, %cst_35 {dimension_numbers = #tpu.dot_dimension_numbers<[1], [0], [0], [1], [0, 0, 1, 1], [], []>} : vector<8x32xf32>, vector<32x128xf32>, vector<8x128xf32> -> vector<8x128xf32>
    %154 = arith.addf %152, %153 : vector<8x128xf32>
    %155 = arith.negf %154 : vector<8x128xf32>
    %156 = math.exp %155 : vector<8x128xf32>
    %cst_36 = arith.constant 1.000000e+00 : f32
    %157 = vector.broadcast %cst_36 : f32 to vector<8x128xf32>
    %158 = arith.addf %157, %156 : vector<8x128xf32>
    %159 = arith.divf %157, %158 : vector<8x128xf32>
    %160 = vector.extract_strided_slice %159 {offsets = [0, 0], sizes = [8, 32], strides = [1, 1]} : vector<8x128xf32> to vector<8x32xf32>
    %161 = vector.extract_strided_slice %159 {offsets = [0, 32], sizes = [8, 32], strides = [1, 1]} : vector<8x128xf32> to vector<8x32xf32>
    %162 = vector.extract_strided_slice %159 {offsets = [0, 64], sizes = [8, 32], strides = [1, 1]} : vector<8x128xf32> to vector<8x32xf32>
    %cst_37 = arith.constant 2.000000e+00 : f32
    %163 = vector.broadcast %cst_37 : f32 to vector<8x32xf32>
    %164 = arith.mulf %163, %162 : vector<8x32xf32>
    %cst_38 = arith.constant 1.000000e+00 : f32
    %165 = vector.broadcast %cst_38 : f32 to vector<8x32xf32>
    %166 = arith.subf %164, %165 : vector<8x32xf32>
    %167 = vector.extract_strided_slice %159 {offsets = [0, 96], sizes = [8, 32], strides = [1, 1]} : vector<8x128xf32> to vector<8x32xf32>
    %168 = arith.mulf %161, %142 : vector<8x32xf32>
    %169 = arith.mulf %160, %166 : vector<8x32xf32>
    %170 = arith.addf %168, %169 : vector<8x32xf32>
    %171 = math.tanh %170 : vector<8x32xf32>
    %172 = arith.mulf %167, %171 : vector<8x32xf32>
    %c0_39 = arith.constant 0 : index
    %c160 = arith.constant 160 : index
    %173 = vector.load %arg8[%c0_39, %c160] : memref<8x256xf32, #tpu.memory_space<vmem>>, vector<8x32xf32>
    tpu.vector_store %arg8[%c0_39, %c160], %172 {strides = array<i32>} : memref<8x256xf32, #tpu.memory_space<vmem>>, vector<8x32xf32>,
    %174 = vector.extract_strided_slice %0 {offsets = [6, 0, 0], sizes = [1, 8, 1], strides = [1, 1, 1]} : vector<8x8x1xf32> to vector<1x8x1xf32>
    %175 = vector.shape_cast %174 : vector<1x8x1xf32> to vector<8x1xf32>
    %176 = vector.broadcast %175 : vector<8x1xf32> to vector<8x128xf32>
    %177 = vector.broadcast %1 : vector<1x128xf32> to vector<8x128xf32>
    %178 = arith.mulf %176, %177 : vector<8x128xf32>
    %179 = vector.broadcast %2 : vector<1x128xf32> to vector<8x128xf32>
    %180 = arith.addf %178, %179 : vector<8x128xf32>
    %cst_40 = arith.constant dense<0.000000e+00> : vector<8x128xf32>
    %181 = tpu.matmul %172, %3, %cst_40 {dimension_numbers = #tpu.dot_dimension_numbers<[1], [0], [0], [1], [0, 0, 1, 1], [], []>} : vector<8x32xf32>, vector<32x128xf32>, vector<8x128xf32> -> vector<8x128xf32>
    %182 = arith.addf %180, %181 : vector<8x128xf32>
    %183 = arith.negf %182 : vector<8x128xf32>
    %184 = math.exp %183 : vector<8x128xf32>
    %cst_41 = arith.constant 1.000000e+00 : f32
    %185 = vector.broadcast %cst_41 : f32 to vector<8x128xf32>
    %186 = arith.addf %185, %184 : vector<8x128xf32>
    %187 = arith.divf %185, %186 : vector<8x128xf32>
    %188 = vector.extract_strided_slice %187 {offsets = [0, 0], sizes = [8, 32], strides = [1, 1]} : vector<8x128xf32> to vector<8x32xf32>
    %189 = vector.extract_strided_slice %187 {offsets = [0, 32], sizes = [8, 32], strides = [1, 1]} : vector<8x128xf32> to vector<8x32xf32>
    %190 = vector.extract_strided_slice %187 {offsets = [0, 64], sizes = [8, 32], strides = [1, 1]} : vector<8x128xf32> to vector<8x32xf32>
    %cst_42 = arith.constant 2.000000e+00 : f32
    %191 = vector.broadcast %cst_42 : f32 to vector<8x32xf32>
    %192 = arith.mulf %191, %190 : vector<8x32xf32>
    %cst_43 = arith.constant 1.000000e+00 : f32
    %193 = vector.broadcast %cst_43 : f32 to vector<8x32xf32>
    %194 = arith.subf %192, %193 : vector<8x32xf32>
    %195 = vector.extract_strided_slice %187 {offsets = [0, 96], sizes = [8, 32], strides = [1, 1]} : vector<8x128xf32> to vector<8x32xf32>
    %196 = arith.mulf %189, %170 : vector<8x32xf32>
    %197 = arith.mulf %188, %194 : vector<8x32xf32>
    %198 = arith.addf %196, %197 : vector<8x32xf32>
    %199 = math.tanh %198 : vector<8x32xf32>
    %200 = arith.mulf %195, %199 : vector<8x32xf32>
    %c0_44 = arith.constant 0 : index
    %c192 = arith.constant 192 : index
    %201 = vector.load %arg8[%c0_44, %c192] : memref<8x256xf32, #tpu.memory_space<vmem>>, vector<8x32xf32>
    tpu.vector_store %arg8[%c0_44, %c192], %200 {strides = array<i32>} : memref<8x256xf32, #tpu.memory_space<vmem>>, vector<8x32xf32>,
    %202 = vector.extract_strided_slice %0 {offsets = [7, 0, 0], sizes = [1, 8, 1], strides = [1, 1, 1]} : vector<8x8x1xf32> to vector<1x8x1xf32>
    %203 = vector.shape_cast %202 : vector<1x8x1xf32> to vector<8x1xf32>
    %204 = vector.broadcast %203 : vector<8x1xf32> to vector<8x128xf32>
    %205 = vector.broadcast %1 : vector<1x128xf32> to vector<8x128xf32>
    %206 = arith.mulf %204, %205 : vector<8x128xf32>
    %207 = vector.broadcast %2 : vector<1x128xf32> to vector<8x128xf32>
    %208 = arith.addf %206, %207 : vector<8x128xf32>
    %cst_45 = arith.constant dense<0.000000e+00> : vector<8x128xf32>
    %209 = tpu.matmul %200, %3, %cst_45 {dimension_numbers = #tpu.dot_dimension_numbers<[1], [0], [0], [1], [0, 0, 1, 1], [], []>} : vector<8x32xf32>, vector<32x128xf32>, vector<8x128xf32> -> vector<8x128xf32>
    %210 = arith.addf %208, %209 : vector<8x128xf32>
    %211 = arith.negf %210 : vector<8x128xf32>
    %212 = math.exp %211 : vector<8x128xf32>
    %cst_46 = arith.constant 1.000000e+00 : f32
    %213 = vector.broadcast %cst_46 : f32 to vector<8x128xf32>
    %214 = arith.addf %213, %212 : vector<8x128xf32>
    %215 = arith.divf %213, %214 : vector<8x128xf32>
    %216 = vector.extract_strided_slice %215 {offsets = [0, 0], sizes = [8, 32], strides = [1, 1]} : vector<8x128xf32> to vector<8x32xf32>
    %217 = vector.extract_strided_slice %215 {offsets = [0, 32], sizes = [8, 32], strides = [1, 1]} : vector<8x128xf32> to vector<8x32xf32>
    %218 = vector.extract_strided_slice %215 {offsets = [0, 64], sizes = [8, 32], strides = [1, 1]} : vector<8x128xf32> to vector<8x32xf32>
    %cst_47 = arith.constant 2.000000e+00 : f32
    %219 = vector.broadcast %cst_47 : f32 to vector<8x32xf32>
    %220 = arith.mulf %219, %218 : vector<8x32xf32>
    %cst_48 = arith.constant 1.000000e+00 : f32
    %221 = vector.broadcast %cst_48 : f32 to vector<8x32xf32>
    %222 = arith.subf %220, %221 : vector<8x32xf32>
    %223 = vector.extract_strided_slice %215 {offsets = [0, 96], sizes = [8, 32], strides = [1, 1]} : vector<8x128xf32> to vector<8x32xf32>
    %224 = arith.mulf %217, %198 : vector<8x32xf32>
    %225 = arith.mulf %216, %222 : vector<8x32xf32>
    %226 = arith.addf %224, %225 : vector<8x32xf32>
    %227 = math.tanh %226 : vector<8x32xf32>
    %228 = arith.mulf %223, %227 : vector<8x32xf32>
    %c0_49 = arith.constant 0 : index
    %c224 = arith.constant 224 : index
    %229 = vector.load %arg8[%c0_49, %c224] : memref<8x256xf32, #tpu.memory_space<vmem>>, vector<8x32xf32>
    tpu.vector_store %arg8[%c0_49, %c224], %228 {strides = array<i32>} : memref<8x256xf32, #tpu.memory_space<vmem>>, vector<8x32xf32>,
    %c0_50 = arith.constant 0 : index
    %c0_51 = arith.constant 0 : index
    %230 = vector.load %arg8[%c0_50, %c0_51] : memref<8x256xf32, #tpu.memory_space<vmem>>, vector<8x256xf32>
    %c0_52 = arith.constant 0 : index
    %c0_53 = arith.constant 0 : index
    %231 = vector.load %arg5[%c0_52, %c0_53] : memref<256x128xf32, #tpu.memory_space<vmem>>, vector<256x128xf32>
    %cst_54 = arith.constant dense<0.000000e+00> : vector<8x128xf32>
    %232 = tpu.matmul %230, %231, %cst_54 {dimension_numbers = #tpu.dot_dimension_numbers<[1], [0], [0], [1], [0, 0, 1, 1], [], []>} : vector<8x256xf32>, vector<256x128xf32>, vector<8x128xf32> -> vector<8x128xf32>
    %c0_55 = arith.constant 0 : index
    %c0_56 = arith.constant 0 : index
    %233 = vector.load %arg6[%c0_55, %c0_56] : memref<1x128xf32, #tpu.memory_space<vmem>>, vector<1x128xf32>
    %234 = vector.broadcast %233 : vector<1x128xf32> to vector<8x128xf32>
    %235 = arith.addf %232, %234 : vector<8x128xf32>
    %236 = tpu.iota {dimensions = array<i32: 1>} : vector<8x128xi32>
    %c16_i32 = arith.constant 16 : i32
    %237 = vector.broadcast %c16_i32 : i32 to vector<8x128xi32>
    %238 = arith.cmpi slt, %236, %237 : vector<8x128xi32>
    %cst_57 = arith.constant 0.000000e+00 : f32
    %239 = vector.broadcast %cst_57 : f32 to vector<8x128xf32>
    %240 = arith.select %238, %235, %239 : vector<8x128xi1>, vector<8x128xf32>
    %241 = arith.mulf %240, %240 : vector<8x128xf32>
    %cst_58 = arith.constant dense<0.000000e+00> : vector<8xf32>
    %242 = vector.multi_reduction <add>, %241, %cst_58 [1] : vector<8x128xf32> to vector<8xf32>
    %243 = vector.shape_cast %242 : vector<8xf32> to vector<8x1xf32>
    %cst_59 = arith.constant 1.000000e-30 : f32
    %244 = vector.broadcast %cst_59 : f32 to vector<8x1xf32>
    %245 = arith.maximumf %243, %244 : vector<8x1xf32>
    %246 = math.rsqrt %245 : vector<8x1xf32>
    %247 = vector.broadcast %246 : vector<8x1xf32> to vector<8x128xf32>
    %248 = arith.mulf %240, %247 : vector<8x128xf32>
    %cst_60 = arith.constant 0.000000e+00 : f32
    %249 = vector.broadcast %cst_60 : f32 to vector<8x128xf32>
    %250 = arith.maximumf %235, %249 : vector<8x128xf32>
    %251 = vector.broadcast %cst_60 : f32 to vector<8x128xf32>
    %252 = arith.subf %235, %251 : vector<8x128xf32>
    %253 = arith.cmpf one, %252, %252 : vector<8x128xf32>
    %254 = vector.broadcast %cst_60 : f32 to vector<8x128xf32>
    %255 = arith.addf %235, %254 : vector<8x128xf32>
    %256 = math.absf %252 : vector<8x128xf32>
    %cst_61 = arith.constant 0.000000e+00 : f32
    %257 = vector.broadcast %cst_61 : f32 to vector<8x128xf32>
    %258 = arith.subf %257, %256 : vector<8x128xf32>
    %259 = math.exp %258 : vector<8x128xf32>
    %260 = math.log1p %259 : vector<8x128xf32>
    %261 = arith.addf %250, %260 : vector<8x128xf32>
    %262 = arith.select %253, %255, %261 : vector<8x128xi1>, vector<8x128xf32>
    %cst_62 = arith.constant 1.000000e+00 : f32
    %263 = vector.broadcast %cst_62 : f32 to vector<8x128xf32>
    %264 = arith.addf %262, %263 : vector<8x128xf32>
    %c16_i32_63 = arith.constant 16 : i32
    %265 = vector.broadcast %c16_i32_63 : i32 to vector<8x128xi32>
    %266 = arith.cmpi eq, %236, %265 : vector<8x128xi32>
    %cst_64 = arith.constant 0.000000e+00 : f32
    %267 = vector.broadcast %cst_64 : f32 to vector<8x128xf32>
    %268 = arith.select %266, %264, %267 : vector<8x128xi1>, vector<8x128xf32>
    %269 = arith.select %238, %248, %268 : vector<8x128xi1>, vector<8x128xf32>
    %c0_65 = arith.constant 0 : index
    %c0_66 = arith.constant 0 : index
    %270 = vector.load %arg7[%c0_65, %c0_66] : memref<8x128xf32, #tpu.memory_space<vmem>>, vector<8x128xf32>
    tpu.vector_store %arg7[%c0_65, %c0_66], %269 {strides = array<i32>} : memref<8x128xf32, #tpu.memory_space<vmem>>, vector<8x128xf32>,
    return
  }
  func.func @transform_0(%arg0: i32) -> (i32, i32, i32) {
    %c0_i32 = arith.constant 0 : i32
    %c0_i32_0 = arith.constant 0 : i32
    %c0_i32_1 = arith.constant 0 : i32
    return %c0_i32, %arg0, %c0_i32_0 : i32, i32, i32
  }
  func.func @transform_1(%arg0: i32) -> (i32, i32) {
    %c0_i32 = arith.constant 0 : i32
    %c0_i32_0 = arith.constant 0 : i32
    %c0_i32_1 = arith.constant 0 : i32
    return %c0_i32, %c0_i32_0 : i32, i32
  }
  func.func @transform_2(%arg0: i32) -> (i32, i32) {
    %c0_i32 = arith.constant 0 : i32
    %c0_i32_0 = arith.constant 0 : i32
    %c0_i32_1 = arith.constant 0 : i32
    return %c0_i32, %c0_i32_0 : i32, i32
  }
  func.func @transform_3(%arg0: i32) -> (i32, i32) {
    %c0_i32 = arith.constant 0 : i32
    %c0_i32_0 = arith.constant 0 : i32
    %c0_i32_1 = arith.constant 0 : i32
    return %c0_i32, %c0_i32_0 : i32, i32
  }
  func.func @transform_4(%arg0: i32) -> (i32, i32) {
    %c0_i32 = arith.constant 0 : i32
    %c0_i32_0 = arith.constant 0 : i32
    %c0_i32_1 = arith.constant 0 : i32
    return %c0_i32, %c0_i32_0 : i32, i32
  }
  func.func @transform_5(%arg0: i32) -> (i32, i32) {
    %c0_i32 = arith.constant 0 : i32
    %c0_i32_0 = arith.constant 0 : i32
    %c0_i32_1 = arith.constant 0 : i32
    return %c0_i32, %c0_i32_0 : i32, i32
  }
  func.func @transform_6(%arg0: i32) -> (i32, i32) {
    %c0_i32 = arith.constant 0 : i32
    %c0_i32_0 = arith.constant 0 : i32
    return %arg0, %c0_i32 : i32, i32
  }
}

</mosaic_0001>

<bundles_post_ra>
// kernel: encoder_forward.1
= control target key start
LH: loop header
LB: loop body
LE: loop exit
PB: predicated region body
PF: predicated region fallthrough
CT: control target
= control target key end

     0   :  { %11 = vsyncpa [#allocation4], 0  ;;  %s1459_s21 = smov [#allocation3]   ;;  %s1713_s0 = inlined_call_operand.vmem [shape: f32[8,8,1], index: 0, kind: input, shape index: {}]   ;;  %s1714_s1 = inlined_call_operand.vmem [shape: f32[1,128], index: 1, kind: input, shape index: {}]   ;;  %s1715_s2 = inlined_call_operand.vmem [shape: f32[1,128], index: 2, kind: input, shape index: {}]   ;;  %s1716_s3 = inlined_call_operand.vmem [shape: f32[32,128], index: 3, kind: input, shape index: {}]   ;;  %s1717_s4 = inlined_call_operand.hbm [shape: f32[256,128], index: 4, kind: input, shape index: {}]   ;;  %s1718_s5 = inlined_call_operand.vmem [shape: f32[1,128], index: 5, kind: input, shape index: {}]   ;;  %s1719_s6 = inlined_call_operand.vmem [shape: f32[8,128], index: 6, kind: output, shape index: {}]  }
   0x1   :  { %s25_s22 = sshll.u32 %s1459_s21, 4  ;;  %s1435_s25 = scalar_lea.hbm %s1717_s4, 4096  ;;  %s26_s22 = int_to_ptr.vmem [resolvable:$true] %s25_s22 }
   0x2   :  { %p1436_p0 = scmp.ne.s32.totalorder %s1717_s4, %s1435_s25  ;;  %p1439_p1 = scmp.lt.u32.totalorder %s1435_s25, %s1717_s4 }
   0x4   :  { %p1441_p2 = pnand %p1439_p1, %p1436_p0 }
   0x6   :  { %1444 = shalt.err (!%p1441_p2)
}
   0x7   :  { %s1445_s30 = scalar_lea.vmem %s26_s22, 4096  ;;  %p1450_p4 = scmp.lt.s32.totalorder %s26_s22, %s26_s22 }
   0x8   :  { %p1446_p3 = scmp.ne.s32.totalorder %s26_s22, %s1445_s30  ;;  %p1451_p5 = scmp.lt.s32.totalorder %s1445_s30, %s1445_s30 }
   0xa   :  { %p1452_p6 = por %p1451_p5, %p1450_p4 }
   0xc   :  { %p1453_p7 = pnand %p1452_p6, %p1446_p3 }
   0xe   :  { %1456 = shalt.err (!%p1453_p7)
}
   0xf   :  { %s1460_s7 = smov 128   ;;  %s1461_s8 = smov 8  }
  0x10   :  { %31 = dma.hbm_to_vmem [thread:$0]  %s1717_s4, 4096, %s26_s22, [#allocation4], %s1460_s7, %s1460_s7, %s1461_s8  }
  0x11   :  { %1457 = dma.done.wait [#allocation4], 4096  }
  0x12   :  { %1458 = vsyncadd [#allocation4], 4294963200  ;;  %v1462_v0 = vmov 0.0|0.0   ;;  %vm1463_vm0 = vmmov 0   ;;  %v1464_v1 = vmov 0.0   ;;  %v1465_v2 = vmov 0  }
  0x13   :  { %1289 = vmatprep.subr.bf16.mxu1 %v1462_v0  ;;  %1209 = vmatprep.mubr.msk.f32.mxu1 %vm1463_vm0, %v1464_v1  ;;  %v47_v3 = vld [vmem:[%s1716_s3] sm:$0xff]  ;;  %v48_v4 = vld [vmem:[%s1716_s3 + $0x8] sm:$0xff]  ;;  %v49_v5 = vld [vmem:[%s1716_s3 + $0x10] sm:$0xff]  ;;  %vm70_vm1 = vcmask 261120   ;;  %vm284_vm2 = vcmask 523520   ;;  %vm397_vm3 = vcmask 785920  }
  0x14   :  { %1379 = vset.pattern.permute.xlu0 %v1465_v2  ;;  %1380 = vset.pattern.permute.xlu1 %v1465_v2  ;;  %v1531_v6 = vpack.c.bf16 %v48_v4, %v47_v3  ;;  %v50_v7 = vld [vmem:[%s1716_s3 + $0x18] sm:$0xff]  ;;  %v37_v8 = vld [vmem:[%s1713_s0] sm:$0xff]  ;;  %v38_v30 = vld [vmem:[%s1713_s0 + $0x8] sm:$0xff]  ;;  %vm506_vm4 = vcmask 1048320  }
  0x15   :  { %1313 = vmatprep.subr.bf16.mxu0 %v1462_v0  ;;  %1253 = vmatprep.mubr.msk.f32.mxu0 %vm1463_vm0, %v1464_v1  ;;  %v1540_v9 = vpack.c.bf16 %v50_v7, %v49_v5  ;;  %v1559_v10 = vld [vmem:[%s1714_s1] ss:$0 sm:$0xff]  ;;  %s1466_s1 = smov 64   ;;  %v39_v52 = vld [vmem:[%s1713_s0 + $0x10] sm:$0xff] }
  0x16   :  { %53 = vperm.xlu0 %1379, %v37_v8   ;;  %1291 = vmatpush3.bf16.msra.mxu1 %v1531_v6  ;;  %v1565_v13 = vld [vmem:[%s1715_s2] ss:$0 sm:$0xff]  ;;  %s1467_s2 = smov 32  }
  0x17   :  { %1315 = vmatpush3.bf16.msra.mxu0 %v1531_v6  ;;  %1292 = vmatprep.subr.bf16.mxu1 %v1462_v0 }
  0x18   :  { %1316 = vmatprep.subr.bf16.mxu0 %v1462_v0 }
  0x1a   :  { %1294 = vmatpush3.bf16.msra.mxu1 %v1540_v9 }
  0x1b   :  { %1318 = vmatpush3.bf16.msra.mxu0 %v1540_v9  ;;  %1295 = vmatprep.subr.bf16.mxu1 %v1462_v0 }
  0x1c   :  { %1325 = vmatprep.subr.bf16.mxu0 %v1462_v0 }
  0x1d   :  { %1210 = vmatmul.mubr.f32.vlgmr.msra.gmra.mrb[0].mxu1 %v1464_v1 }
  0x1e   :  { %1297 = vmatpush3.bf16.msra.mxu1 %v1531_v6  ;;  %1220 = vmatprep.mubr.msk.f32.mxu1 %vm1463_vm0, %v1464_v1 }
  0x1f   :  { %1298 = vmatprep.subr.bf16.mxu1 %v1462_v0 }
  0x22   :  { %1300 = vmatpush3.bf16.msra.mxu1 %v1540_v9 }
  0x23   :  { %1301 = vmatprep.subr.bf16.mxu1 %v1462_v0 }
  0x95   :  { %v54_v11 = vpop.permute.xlu0 %53 }
  0x96   :  { %v62_v12 = vmul.f32 %v1559_v10, %v54_v11 }
  0x98   :  { %v69_v14 = vadd.f32 %v1565_v13, %v62_v12 }
  0xf0   :  { %v140_v15 = vpop.f32.mrb[0].mxu1 }
  0xf1   :  { %v144_v16 = vadd.f32 %v140_v15, %v69_v14  ;;  %v1211_v17 = vpop.f32.mrb[1].mxu1 }
  0xf3   :  { %v1102_v18 = vmul.f32 -1.442695, %v144_v16  ;;  %v40_v16 = vld [vmem:[%s1713_s0 + $0x18] sm:$0xff] }
  0xf5   :  { %1381 = vpow2.f32 %v1102_v18 }
  0xff   :  { %v1382_v19 = vpop.eup %1381 }
 0x100   :  { %v148_v20 = vadd.f32 1.0, %v1382_v19 }
 0x102   :  { %1383 = vrcp.f32 %v148_v20 }
 0x10c   :  { %v1384_v21 = vpop.eup %1383 }
 0x10d   :  { %v151_v22 = vmul.f32 2.0, %v1384_v21  ;;  %v153_v26 = vmul.f32 0.0, %v1384_v21 }
 0x10f   :  { %v1103_v23 = vadd.f32 -1.0, %v151_v22 }
 0x111   :  { %155 = vrot.lane.b32.xlu0 %v1103_v23, %s1466_s1 }
 0x183   :  { %v156_v24 = vpop.permute.xlu0 %155 }
 0x184   :  { %v158_v25 = vmul.f32 %v1384_v21, %v156_v24 }
 0x186   :  { %160 = vrot.lane.b32.xlu1 %v158_v25, %s1467_s2 }
 0x1f8   :  { %v161_v27 = vpop.permute.xlu1 %160 }
 0x1f9   :  { %v163_v28 = vadd.f32 %v161_v27, %v153_v26 }
 0x1fb   :  { %1385 = vtanh.f32 %v163_v28 }
 0x205   :  { %v1386_v29 = vpop.eup %1385 }
 0x206   :  { %166 = vrot.lane.b32.xlu1 %v1386_v29, %s1466_s1 }
 0x20a   :  { %177 = vperm.xlu1 %1380, %v38_v30  }
 0x278   :  { %v167_v31 = vpop.permute.xlu1 %166 }
 0x279   :  { %v169_v32 = vmul.f32 %v1384_v21, %v167_v31 }
 0x27b   :  { %171 = vrot.lane.b32.xlu0 %v169_v32, %s1467_s2 }
 0x289   :  { %v178_v34 = vpop.permute.xlu1 %177 }
 0x28a   :  { %v180_v35 = vmul.f32 %v1559_v10, %v178_v34 }
 0x28c   :  { %v181_v36 = vadd.f32 %v1565_v13, %v180_v35 }
 0x2ed   :  { %v172_v33 = vpop.permute.xlu0 %171 }
 0x2ee   :  { %174 = vst.msk [vmem:[#allocation2] sm:$0xff] %vm70_vm1, %v172_v33  ;;  %1221 = vmatmul.mubr.msk.f32.vlgmr.msra.gmra.mrb[2].mxu1 %vm70_vm1, %v172_v33 }
 0x2ef   :  { %1303 = vmatpush3.bf16.msra.mxu1 %v1531_v6  ;;  %1231 = vmatprep.mubr.msk.f32.mxu1 %vm1463_vm0, %v1464_v1 }
 0x2f0   :  { %1304 = vmatprep.subr.bf16.mxu1 %v1462_v0 }
 0x2f3   :  { %1306 = vmatpush3.bf16.msra.mxu1 %v1540_v9 }
 0x2f4   :  { %1307 = vmatprep.subr.bf16.mxu1 %v1462_v0 }
 0x3c1   :  { %v250_v37 = vpop.f32.mrb[2].mxu1 }
 0x3c2   :  { %v254_v38 = vadd.f32 %v250_v37, %v181_v36  ;;  %v1222_v39 = vpop.f32.mrb[3].mxu1 }
 0x3c4   :  { %v1105_v40 = vmul.f32 -1.442695, %v254_v38  ;;  %v41_v38 = vld [vmem:[%s1713_s0 + $0x20] sm:$0xff] }
 0x3c6   :  { %1387 = vpow2.f32 %v1105_v40 }
 0x3d0   :  { %v1388_v41 = vpop.eup %1387 }
 0x3d1   :  { %v258_v42 = vadd.f32 1.0, %v1388_v41 }
 0x3d3   :  { %1389 = vrcp.f32 %v258_v42 }
 0x3dd   :  { %v1390_v43 = vpop.eup %1389 }
 0x3de   :  { %v261_v44 = vmul.f32 2.0, %v1390_v43  ;;  %v263_v48 = vmul.f32 %v1390_v43, %v163_v28 }
 0x3e0   :  { %v1106_v45 = vadd.f32 -1.0, %v261_v44 }
 0x3e2   :  { %265 = vrot.lane.b32.xlu0 %v1106_v45, %s1466_s1 }
 0x454   :  { %v266_v46 = vpop.permute.xlu0 %265 }
 0x455   :  { %v268_v47 = vmul.f32 %v1390_v43, %v266_v46 }
 0x457   :  { %270 = vrot.lane.b32.xlu1 %v268_v47, %s1467_s2 }
 0x4c9   :  { %v271_v49 = vpop.permute.xlu1 %270 }
 0x4ca   :  { %v273_v50 = vadd.f32 %v271_v49, %v263_v48 }
 0x4cc   :  { %1391 = vtanh.f32 %v273_v50 }
 0x4d6   :  { %v1392_v51 = vpop.eup %1391 }
 0x4d7   :  { %276 = vrot.lane.b32.xlu0 %v1392_v51, %s1466_s1 }
 0x4db   :  { %288 = vperm.xlu0 %1379, %v39_v52  }
 0x549   :  { %v277_v53 = vpop.permute.xlu0 %276 }
 0x54a   :  { %v1591_v54 = vmul.f32 %v1390_v43, %v277_v53 }
 0x54c   :  { %293 = vrot.lane.b32.xlu1 %v1591_v54, %s1467_s2 }
 0x55a   :  { %v289_v56 = vpop.permute.xlu0 %288 }
 0x55b   :  { %v291_v57 = vmul.f32 %v1559_v10, %v289_v56 }
 0x55d   :  { %v292_v58 = vadd.f32 %v1565_v13, %v291_v57 }
 0x5be   :  { %v294_v55 = vpop.permute.xlu1 %293 }
 0x5bf   :  { %1232 = vmatmul.mubr.msk.f32.vlgmr.msra.gmra.mrb[4].mxu1 %vm70_vm1, %v294_v55 }
 0x5c0   :  { %1309 = vmatpush3.bf16.msra.mxu1 %v1531_v6  ;;  %1242 = vmatprep.mubr.msk.f32.mxu1 %vm1463_vm0, %v1464_v1 }
 0x5c1   :  { %1310 = vmatprep.subr.bf16.mxu1 %v1462_v0 }
 0x5c4   :  { %1312 = vmatpush3.bf16.msra.mxu1 %v1540_v9 }
 0x5c5   :  { %1319 = vmatprep.subr.bf16.mxu1 %v1462_v0 }
 0x692   :  { %v363_v59 = vpop.f32.mrb[4].mxu1 }
 0x693   :  { %v367_v60 = vadd.f32 %v363_v59, %v292_v58  ;;  %v1233_v61 = vpop.f32.mrb[5].mxu1 }
 0x694   :  { %v42_v61 = vld [vmem:[%s1713_s0 + $0x28] sm:$0xff] }
 0x695   :  { %v1108_v62 = vmul.f32 -1.442695, %v367_v60 }
 0x697   :  { %1393 = vpow2.f32 %v1108_v62 }
 0x6a1   :  { %v1394_v63 = vpop.eup %1393 }
 0x6a2   :  { %v371_v2 = vadd.f32 1.0, %v1394_v63 }
 0x6a4   :  { %1395 = vrcp.f32 %v371_v2 }
 0x6ae   :  { %v1396_v3 = vpop.eup %1395 }
 0x6af   :  { %v374_v4 = vmul.f32 2.0, %v1396_v3  ;;  %v376_v11 = vmul.f32 %v1396_v3, %v273_v50 }
 0x6b1   :  { %v1109_v5 = vadd.f32 -1.0, %v374_v4 }
 0x6b3   :  { %378 = vrot.lane.b32.xlu1 %v1109_v5, %s1466_s1 }
 0x725   :  { %v379_v7 = vpop.permute.xlu1 %378 }
 0x726   :  { %v381_v8 = vmul.f32 %v1396_v3, %v379_v7 }
 0x728   :  { %383 = vrot.lane.b32.xlu0 %v381_v8, %s1467_s2 }
 0x79a   :  { %v384_v12 = vpop.permute.xlu0 %383 }
 0x79b   :  { %v386_v14 = vadd.f32 %v384_v12, %v376_v11 }
 0x79d   :  { %1397 = vtanh.f32 %v386_v14 }
 0x7a7   :  { %v1398_v15 = vpop.eup %1397 }
 0x7a8   :  { %389 = vrot.lane.b32.xlu1 %v1398_v15, %s1466_s1 }
 0x7ac   :  { %401 = vperm.xlu1 %1380, %v40_v16  }
 0x81a   :  { %v390_v17 = vpop.permute.xlu1 %389 }
 0x81b   :  { %v1610_v18 = vmul.f32 %v1396_v3, %v390_v17 }
 0x81d   :  { %406 = vrot.lane.b32.xlu0 %v1610_v18, %s1467_s2 }
 0x82b   :  { %v402_v20 = vpop.permute.xlu1 %401 }
 0x82c   :  { %v404_v21 = vmul.f32 %v1559_v10, %v402_v20 }
 0x82e   :  { %v405_v22 = vadd.f32 %v1565_v13, %v404_v21 }
 0x88f   :  { %v407_v19 = vpop.permute.xlu0 %406 }
 0x890   :  { %1243 = vmatmul.mubr.msk.f32.vlgmr.msra.gmra.mrb[6].mxu1 %vm70_vm1, %v407_v19 }
 0x891   :  { %1321 = vmatpush3.bf16.msra.mxu1 %v1531_v6  ;;  %1264 = vmatprep.mubr.msk.f32.mxu1 %vm1463_vm0, %v1464_v1 }
 0x892   :  { %1322 = vmatprep.subr.bf16.mxu1 %v1462_v0 }
 0x895   :  { %1324 = vmatpush3.bf16.msra.mxu1 %v1540_v9 }
 0x896   :  { %1331 = vmatprep.subr.bf16.mxu1 %v1462_v0 }
 0x963   :  { %v476_v23 = vpop.f32.mrb[6].mxu1 }
 0x964   :  { %v480_v24 = vadd.f32 %v476_v23, %v405_v22  ;;  %v1244_v25 = vpop.f32.mrb[7].mxu1  ;;  %v43_v22 = vld [vmem:[%s1713_s0 + $0x30] sm:$0xff] }
 0x966   :  { %v1111_v26 = vmul.f32 -1.442695, %v480_v24 }
 0x968   :  { %1399 = vpow2.f32 %v1111_v26 }
 0x972   :  { %v1400_v27 = vpop.eup %1399 }
 0x973   :  { %v484_v28 = vadd.f32 1.0, %v1400_v27 }
 0x975   :  { %1401 = vrcp.f32 %v484_v28 }
 0x97f   :  { %v1402_v29 = vpop.eup %1401 }
 0x980   :  { %v487_v30 = vmul.f32 2.0, %v1402_v29  ;;  %v489_v34 = vmul.f32 %v1402_v29, %v386_v14 }
 0x982   :  { %v1112_v31 = vadd.f32 -1.0, %v487_v30 }
 0x984   :  { %491 = vrot.lane.b32.xlu0 %v1112_v31, %s1466_s1 }
 0x9f6   :  { %v492_v32 = vpop.permute.xlu0 %491 }
 0x9f7   :  { %v494_v33 = vmul.f32 %v1402_v29, %v492_v32 }
 0x9f9   :  { %496 = vrot.lane.b32.xlu1 %v494_v33, %s1467_s2 }
 0xa6b   :  { %v497_v35 = vpop.permute.xlu1 %496 }
 0xa6c   :  { %v499_v36 = vadd.f32 %v497_v35, %v489_v34 }
 0xa6e   :  { %1403 = vtanh.f32 %v499_v36 }
 0xa78   :  { %v1404_v37 = vpop.eup %1403 }
 0xa79   :  { %502 = vrot.lane.b32.xlu0 %v1404_v37, %s1466_s1 }
 0xa7d   :  { %510 = vperm.xlu0 %1379, %v41_v38  }
 0xaeb   :  { %v503_v39 = vpop.permute.xlu0 %502 }
 0xaec   :  { %v1629_v40 = vmul.f32 %v1402_v29, %v503_v39 }
 0xaee   :  { %516 = vrot.lane.b32.xlu1 %v1629_v40, %s1467_s2 }
 0xafc   :  { %v511_v42 = vpop.permute.xlu0 %510 }
 0xafd   :  { %v513_v43 = vmul.f32 %v1559_v10, %v511_v42 }
 0xaff   :  { %v514_v44 = vadd.f32 %v1565_v13, %v513_v43 }
 0xb60   :  { %v517_v41 = vpop.permute.xlu1 %516 }
 0xb61   :  { %1254 = vmatmul.mubr.msk.f32.vlgmr.msra.gmra.mrb[0].mxu0 %vm70_vm1, %v517_v41 }
 0xb62   :  { %1327 = vmatpush3.bf16.msra.mxu0 %v1531_v6  ;;  %1275 = vmatprep.mubr.msk.f32.mxu0 %vm1463_vm0, %v1464_v1 }
 0xb63   :  { %1328 = vmatprep.subr.bf16.mxu0 %v1462_v0 }
 0xb66   :  { %1330 = vmatpush3.bf16.msra.mxu0 %v1540_v9 }
 0xc34   :  { %v586_v45 = vpop.f32.mrb[0].mxu0 }
 0xc35   :  { %v590_v46 = vadd.f32 %v586_v45, %v514_v44  ;;  %v1255_v47 = vpop.f32.mrb[1].mxu0  ;;  %v44_v45 = vld [vmem:[%s1713_s0 + $0x38] sm:$0xff]  ;;  %s1468_s0 = smov 96  }
 0xc37   :  { %v1114_v48 = vmul.f32 -1.442695, %v590_v46 }
 0xc39   :  { %1405 = vpow2.f32 %v1114_v48 }
 0xc43   :  { %v1406_v49 = vpop.eup %1405 }
 0xc44   :  { %v594_v50 = vadd.f32 1.0, %v1406_v49 }
 0xc46   :  { %1407 = vrcp.f32 %v594_v50 }
 0xc50   :  { %v1408_v51 = vpop.eup %1407 }
 0xc51   :  { %v597_v52 = vmul.f32 2.0, %v1408_v51  ;;  %v599_v57 = vmul.f32 %v1408_v51, %v499_v36 }
 0xc53   :  { %v1115_v53 = vadd.f32 -1.0, %v597_v52 }
 0xc55   :  { %601 = vrot.lane.b32.xlu1 %v1115_v53, %s1466_s1 }
 0xcc7   :  { %v602_v55 = vpop.permute.xlu1 %601 }
 0xcc8   :  { %v604_v56 = vmul.f32 %v1408_v51, %v602_v55 }
 0xcca   :  { %606 = vrot.lane.b32.xlu0 %v604_v56, %s1467_s2 }
 0xd3c   :  { %v607_v58 = vpop.permute.xlu0 %606 }
 0xd3d   :  { %v609_v59 = vadd.f32 %v607_v58, %v599_v57 }
 0xd3f   :  { %1409 = vtanh.f32 %v609_v59 }
 0xd49   :  { %v1410_v60 = vpop.eup %1409 }
 0xd4a   :  { %612 = vrot.lane.b32.xlu1 %v1410_v60, %s1466_s1 }
 0xd4e   :  { %623 = vperm.xlu1 %1380, %v42_v61  }
 0xdbc   :  { %v613_v62 = vpop.permute.xlu1 %612 }
 0xdbd   :  { %v615_v63 = vmul.f32 %v1408_v51, %v613_v62 }
 0xdbf   :  { %617 = vrot.lane.b32.xlu0 %v615_v63, %s1467_s2  ;;  %v969_v63 = vld [vmem:[#allocation3 + $0x80] sm:$0xff] }
 0xdcd   :  { %v624_v3 = vpop.permute.xlu1 %623 }
 0xdce   :  { %v626_v4 = vmul.f32 %v1559_v10, %v624_v3  ;;  %v953_v3 = vld [vmem:[#allocation3] sm:$0xff] }
 0xdd0   :  { %v627_v5 = vadd.f32 %v1565_v13, %v626_v4 }
 0xe31   :  { %v618_v2 = vpop.permute.xlu0 %617 }
 0xe32   :  { %620 = vst.msk [vmem:[#allocation2 + $0x8] sm:$0xff] %vm70_vm1, %v618_v2  ;;  %1265 = vmatmul.mubr.msk.f32.vlgmr.msra.gmra.mrb[8].mxu1 %vm70_vm1, %v618_v2  ;;  %v970_v2 = vld [vmem:[#allocation3 + $0x88] sm:$0xff] }
 0xe33   :  { %1333 = vmatpush3.bf16.msra.mxu1 %v1531_v6  ;;  %1286 = vmatprep.mubr.msk.f32.mxu1 %vm1463_vm0, %v1464_v1 }
 0xe34   :  { %1334 = vmatprep.subr.bf16.mxu1 %v1462_v0 }
 0xe37   :  { %1336 = vmatpush3.bf16.msra.mxu1 %v1540_v9 }
 0xf05   :  { %v696_v7 = vpop.f32.mrb[8].mxu1 }
 0xf06   :  { %v700_v8 = vadd.f32 %v696_v7, %v627_v5  ;;  %v1266_v11 = vpop.f32.mrb[9].mxu1  ;;  %v1337_v5 = vpack.c.bf16 %v970_v2, %v969_v63  ;;  %v954_v7 = vld [vmem:[#allocation3 + $0x8] sm:$0xff]  ;;  %v1125_v63 = vld [vmem:[%s1718_s5] ss:$0 sm:$0xff] }
 0xf07   :  { %v1339_v11 = vpack.c.bf16 %v954_v7, %v953_v3 }
 0xf08   :  { %v1117_v12 = vmul.f32 -1.442695, %v700_v8  ;;  %v971_v8 = vld [vmem:[#allocation3 + $0x90] sm:$0xff]  ;;  %1338 = vmatprep.subr.bf16.mxu0 %v1337_v5 }
 0xf0a   :  { %1411 = vpow2.f32 %v1117_v12 }
 0xf14   :  { %v1412_v14 = vpop.eup %1411 }
 0xf15   :  { %v704_v15 = vadd.f32 1.0, %v1412_v14  ;;  %v956_v14 = vld [vmem:[#allocation3 + $0x18] sm:$0xff] }
 0xf17   :  { %1413 = vrcp.f32 %v704_v15  ;;  %v973_v15 = vld [vmem:[#allocation3 + $0xa0] sm:$0xff] }
 0xf21   :  { %v1414_v6 = vpop.eup %1413 }
 0xf22   :  { %v707_v16 = vmul.f32 2.0, %v1414_v6  ;;  %v709_v17 = vmul.f32 %v1414_v6, %v609_v59 }
 0xf24   :  { %v1118_v1 = vadd.f32 -1.0, %v707_v16 }
 0xf26   :  { %711 = vrot.lane.b32.xlu0 %v1118_v1, %s1466_s1 }
 0xf98   :  { %v712_v0 = vpop.permute.xlu0 %711 }
 0xf99   :  { %v714_v9 = vmul.f32 %v1414_v6, %v712_v0 }
 0xf9b   :  { %716 = vrot.lane.b32.xlu1 %v714_v9, %s1467_s2  ;;  %v957_v9 = vld [vmem:[#allocation3 + $0x20] sm:$0xff] }
0x100d   :  { %v717_v19 = vpop.permute.xlu1 %716 }
0x100e   :  { %v719_v20 = vadd.f32 %v717_v19, %v709_v17  ;;  %v958_v17 = vld [vmem:[#allocation3 + $0x28] sm:$0xff]  ;;  %v975_v19 = vld [vmem:[#allocation3 + $0xb0] sm:$0xff] }
0x1010   :  { %1415 = vtanh.f32 %v719_v20 }
0x101a   :  { %v1416_v21 = vpop.eup %1415 }
0x101b   :  { %722 = vrot.lane.b32.xlu0 %v1416_v21, %s1466_s1  ;;  %v1347_v21 = vpack.c.bf16 %v958_v17, %v957_v9 }
0x101f   :  { %733 = vperm.xlu0 %1379, %v43_v22  }
0x108d   :  { %v723_v23 = vpop.permute.xlu0 %722 }
0x108e   :  { %v725_v24 = vmul.f32 %v1414_v6, %v723_v23  ;;  %v974_v6 = vld [vmem:[#allocation3 + $0xa8] sm:$0xff]  ;;  %v959_v23 = vld [vmem:[#allocation3 + $0x30] sm:$0xff] }
0x108f   :  { %v1345_v0 = vpack.c.bf16 %v974_v6, %v973_v15 }
0x1090   :  { %738 = vrot.lane.b32.xlu1 %v725_v24, %s1467_s2 }
0x109e   :  { %v734_v26 = vpop.permute.xlu0 %733 }
0x109f   :  { %v736_v27 = vmul.f32 %v1559_v10, %v734_v26  ;;  %v978_v26 = vld [vmem:[#allocation3 + $0xc8] sm:$0xff] }
0x10a1   :  { %v737_v28 = vadd.f32 %v1565_v13, %v736_v27 }
0x1102   :  { %v739_v25 = vpop.permute.xlu1 %738 }
0x1103   :  { %1276 = vmatmul.mubr.msk.f32.vlgmr.msra.gmra.mrb[2].mxu0 %vm70_vm1, %v739_v25  ;;  %v977_v25 = vld [vmem:[#allocation3 + $0xc0] sm:$0xff] }
0x1104   :  { %1340 = vmatpush3.bf16.msra.mxu0 %v1339_v11 }
0x11d6   :  { %v808_v29 = vpop.f32.mrb[2].mxu0 }
0x11d7   :  { %v812_v30 = vadd.f32 %v808_v29, %v737_v28  ;;  %v1277_v31 = vpop.f32.mrb[3].mxu0  ;;  %v1353_v28 = vpack.c.bf16 %v978_v26, %v977_v25  ;;  %v961_v29 = vld [vmem:[#allocation3 + $0x40] sm:$0xff] }
0x11d9   :  { %v1120_v32 = vmul.f32 -1.442695, %v812_v30  ;;  %v962_v30 = vld [vmem:[#allocation3 + $0x48] sm:$0xff] }
0x11da   :  { %v1355_v31 = vpack.c.bf16 %v962_v30, %v961_v29 }
0x11db   :  { %1417 = vpow2.f32 %v1120_v32 }
0x11e5   :  { %v1418_v33 = vpop.eup %1417 }
0x11e6   :  { %v816_v34 = vadd.f32 1.0, %v1418_v33  ;;  %v979_v33 = vld [vmem:[#allocation3 + $0xd0] sm:$0xff] }
0x11e8   :  { %1419 = vrcp.f32 %v816_v34  ;;  %v980_v34 = vld [vmem:[#allocation3 + $0xd8] sm:$0xff] }
0x11f2   :  { %v1420_v35 = vpop.eup %1419 }
0x11f3   :  { %v819_v36 = vmul.f32 2.0, %v1420_v35  ;;  %v821_v41 = vmul.f32 %v1420_v35, %v719_v20  ;;  %v976_v20 = vld [vmem:[#allocation3 + $0xb8] sm:$0xff] }
0x11f4   :  { %v1349_v22 = vpack.c.bf16 %v976_v20, %v975_v19 }
0x11f5   :  { %v1121_v37 = vadd.f32 -1.0, %v819_v36  ;;  %v1357_v36 = vpack.c.bf16 %v980_v34, %v979_v33 }
0x11f7   :  { %823 = vrot.lane.b32.xlu1 %v1121_v37, %s1466_s1  ;;  %v963_v37 = vld [vmem:[#allocation3 + $0x50] sm:$0xff] }
0x1269   :  { %v824_v38 = vpop.permute.xlu1 %823 }
0x126a   :  { %v826_v39 = vmul.f32 %v1420_v35, %v824_v38  ;;  %v964_v38 = vld [vmem:[#allocation3 + $0x58] sm:$0xff] }
0x126c   :  { %828 = vrot.lane.b32.xlu0 %v826_v39, %s1467_s2  ;;  %v1359_v39 = vpack.c.bf16 %v964_v38, %v963_v37 }
0x12de   :  { %v829_v42 = vpop.permute.xlu0 %828 }
0x12df   :  { %v1669_v43 = vadd.f32 %v829_v42, %v821_v41  ;;  %v981_v41 = vld [vmem:[#allocation3 + $0xe0] sm:$0xff]  ;;  %v982_v42 = vld [vmem:[#allocation3 + $0xe8] sm:$0xff] }
0x12e1   :  { %1421 = vtanh.f32 %v1669_v43 }
0x12eb   :  { %v1422_v44 = vpop.eup %1421 }
0x12ec   :  { %834 = vrot.lane.b32.xlu1 %v1422_v44, %s1466_s1  ;;  %v1361_v44 = vpack.c.bf16 %v982_v42, %v981_v41 }
0x12f0   :  { %845 = vperm.xlu1 %1380, %v44_v45   ;;  %v965_v45 = vld [vmem:[#allocation3 + $0x60] sm:$0xff] }
0x135e   :  { %v835_v46 = vpop.permute.xlu1 %834 }
0x135f   :  { %v1676_v47 = vmul.f32 %v1420_v35, %v835_v46  ;;  %v966_v46 = vld [vmem:[#allocation3 + $0x68] sm:$0xff] }
0x1361   :  { %850 = vrot.lane.b32.xlu0 %v1676_v47, %s1467_s2 }
0x136f   :  { %v846_v49 = vpop.permute.xlu1 %845 }
0x1370   :  { %v848_v50 = vmul.f32 %v1559_v10, %v846_v49  ;;  %v983_v49 = vld [vmem:[#allocation3 + $0xf0] sm:$0xff] }
0x1372   :  { %v849_v51 = vadd.f32 %v1565_v13, %v848_v50  ;;  %v984_v50 = vld [vmem:[#allocation3 + $0xf8] sm:$0xff] }
0x13d3   :  { %v851_v48 = vpop.permute.xlu0 %850 }
0x13d4   :  { %1287 = vmatmul.mubr.msk.f32.vlgmr.msra.gmra.mrb[10].mxu1 %vm70_vm1, %v851_v48  ;;  %v1363_v48 = vpack.c.bf16 %v966_v46, %v965_v45 }
0x14a7   :  { %v920_v52 = vpop.f32.mrb[10].mxu1 }
0x14a8   :  { %v924_v53 = vadd.f32 %v920_v52, %v849_v51  ;;  %v1288_v55 = vpop.f32.mrb[11].mxu1  ;;  %v1365_v51 = vpack.c.bf16 %v984_v50, %v983_v49  ;;  %v968_v52 = vld [vmem:[#allocation3 + $0x78] sm:$0xff] }
0x14aa   :  { %v1123_v56 = vmul.f32 -1.442695, %v924_v53 }
0x14ac   :  { %1423 = vpow2.f32 %v1123_v56 }
0x14b6   :  { %v1424_v57 = vpop.eup %1423 }
0x14b7   :  { %v928_v58 = vadd.f32 1.0, %v1424_v57 }
0x14b9   :  { %1425 = vrcp.f32 %v928_v58 }
0x14c3   :  { %v1683_v59 = vpop.eup %1425 }
0x14c4   :  { %v931_v60 = vmul.f32 2.0, %v1683_v59 }
0x14c6   :  { %v1124_v61 = vadd.f32 -1.0, %v931_v60 }
0x14c8   :  { %935 = vrot.lane.b32.xlu0 %v1124_v61, %s1466_s1 }
0x14cc   :  { %727 = vrot.lane.b32.xlu0 %v725_v24, %s1466_s1  ;;  %v960_v24 = vld [vmem:[#allocation3 + $0x38] sm:$0xff] }
0x14cd   :  { %v1351_v27 = vpack.c.bf16 %v960_v24, %v959_v23 }
0x14d0   :  { %281 = vrot.lane.b32.xlu0 %v1591_v54, %s1466_s1  ;;  %v972_v54 = vld [vmem:[#allocation3 + $0x98] sm:$0xff] }
0x14d1   :  { %v1341_v12 = vpack.c.bf16 %v972_v54, %v971_v8 }
0x14d3   :  { %1342 = vmatprep.subr.bf16.mxu0 %v1341_v12 }
0x14d4   :  { %394 = vrot.lane.b32.xlu0 %v1610_v18, %s1468_s0  ;;  %v955_v18 = vld [vmem:[#allocation3 + $0x10] sm:$0xff] }
0x14d5   :  { %v1343_v16 = vpack.c.bf16 %v956_v14, %v955_v18 }
0x14d7   :  { %1344 = vmatpush3.bf16.msra.mxu0 %v1343_v16 }
0x14d8   :  { %1346 = vmatprep.subr.bf16.mxu0 %v1345_v0 }
0x14db   :  { %1348 = vmatpush3.bf16.msra.mxu0 %v1347_v21 }
0x14dc   :  { %1350 = vmatprep.subr.bf16.mxu0 %v1349_v22 }
0x14df   :  { %1352 = vmatpush3.bf16.msra.mxu0 %v1351_v27 }
0x14e0   :  { %1354 = vmatprep.subr.bf16.mxu0 %v1353_v28 }
0x14e3   :  { %1356 = vmatpush3.bf16.msra.mxu0 %v1355_v31 }
0x14e4   :  { %1358 = vmatprep.subr.bf16.mxu0 %v1357_v36 }
0x14e7   :  { %1360 = vmatpush3.bf16.msra.mxu0 %v1359_v39 }
0x14e8   :  { %1362 = vmatprep.subr.bf16.mxu0 %v1361_v44 }
0x14eb   :  { %1364 = vmatpush3.bf16.msra.mxu0 %v1363_v48 }
0x14ec   :  { %1366 = vmatprep.subr.bf16.mxu0 %v1365_v51 }
0x153a   :  { %v936_v10 = vpop.permute.xlu0 %935 }
0x153b   :  { %v938_v13 = vmul.f32 %v1683_v59, %v936_v10  ;;  %v1062_v10 = vlaneseq }
0x153d   :  { %940 = vrot.lane.b32.xlu1 %v938_v13, %s1467_s2  ;;  %v1063_v13 = vand.u32 127, %v1062_v10 }
0x153e   :  { %v728_v62 = vpop.permute.xlu0 %727 }
0x153f   :  { %730 = vst.msk [vmem:[#allocation2 + $0x8] sm:$0xff] %vm284_vm2, %v728_v62  ;;  %vm1064_vm5 = vcmp.lt.s32.totalorder %v1063_v13, 16  ;;  %vm1091_vm8 = vcmp.eq.s32.totalorder %v1063_v13, 16 }
0x1542   :  { %v282_v4 = vpop.permute.xlu0 %281 }
0x1543   :  { %285 = vst.msk [vmem:[#allocation2] sm:$0xff] %vm284_vm2, %v282_v4 }
0x1546   :  { %v395_v1 = vpop.permute.xlu0 %394 }
0x1547   :  { %398 = vst.msk [vmem:[#allocation2] sm:$0xff] %vm397_vm3, %v395_v1 }
0x1548   :  { %507 = vst.msk [vmem:[#allocation2] sm:$0xff] %vm506_vm4, %v1629_v40  ;;  %v933_v40 = vmul.f32 %v1683_v59, %v1669_v43  ;;  %v967_v43 = vld [vmem:[#allocation3 + $0x70] sm:$0xff] }
0x1549   :  { %v1367_v53 = vpack.c.bf16 %v968_v52, %v967_v43 }
0x154b   :  { %1368 = vmatpush3.bf16.msra.mxu0 %v1367_v53 }
0x154f   :  { %v951_v61 = vld [vmem:[#allocation2] sm:$0xff] }
0x15af   :  { %v941_v32 = vpop.permute.xlu1 %940 }
0x15b0   :  { %v943_v35 = vadd.f32 %v941_v32, %v933_v40 }
0x15b2   :  { %1427 = vtanh.f32 %v943_v35 }
0x15bc   :  { %v1428_v55 = vpop.eup %1427 }
0x15bd   :  { %946 = vrot.lane.b32.xlu1 %v1428_v55, %s1466_s1 }
0x15c1   :  { %839 = vrot.lane.b32.xlu1 %v1676_v47, %s1468_s0 }
0x162f   :  { %v947_v56 = vpop.permute.xlu1 %946 }
0x1630   :  { %v949_v57 = vmul.f32 %v1683_v59, %v947_v56 }
0x1633   :  { %v840_v58 = vpop.permute.xlu1 %839 }
0x1634   :  { %842 = vst.msk [vmem:[#allocation2 + $0x8] sm:$0xff] %vm397_vm3, %v840_v58 }
0x1635   :  { %950 = vst.msk [vmem:[#allocation2 + $0x8] sm:$0xff] %vm506_vm4, %v949_v57 }
0x163c   :  { %v952_v60 = vld [vmem:[#allocation2 + $0x8] sm:$0xff] }
0x163d   :  { %1056 = vmatprep.mubr.f32.mxu0 %v952_v60 }
0x163e   :  { %1057 = vmatmul.mubr.f32.vlgmr.msra.gmra.mrb[4].mxu0 %v951_v61 }
0x1711   :  { %v1198_v62 = vpop.f32.mrb[4].mxu0 }
0x1712   :  { %v1199_v47 = vpop.f32.mrb[5].mxu0 }
0x1713   :  { %v1200_v2 = vadd.f32 %v1199_v47, %v1198_v62 }
0x1715   :  { %v1059_v59 = vadd.f32 %v1200_v2, %v1125_v63 }
0x1717   :  { %v1075_v3 = vand.u32 2147483647, %v1059_v59  ;;  %v1065_v4 = vsel %vm1064_vm5, %v1059_v59, 0.0  ;;  %v1072_v1 = vmax.f32 %v1059_v59, 0.0  ;;  %vm1073_vm7 = vcmp.ne.f32.partialorder %v1059_v59, %v1059_v59 }
0x1718   :  { %v1066_v5 = vmul.f32 %v1065_v4, %v1065_v4 }
0x1719   :  { %v1076_v7 = vsub.f32 0.0, %v1075_v3 }
0x171a   :  { %1067 = vadd.xlane.f32.xlu1 %v1066_v5 }
0x171b   :  { %v1077_v8 = vmul.f32 1.442695, %v1076_v7 }
0x171d   :  { %1429 = vpow2.f32 %v1077_v8 }
0x1727   :  { %v1430_v54 = vpop.eup %1429 }
0x1728   :  { %v1079_v11 = vadd.f32 1.0, %v1430_v54  ;;  %v1082_v12 = vmul.f32 -0.5, %v1430_v54  ;;  %v1085_v14 = vand.u32 2147483647, %v1430_v54 }
0x172a   :  { %1431 = vlog2.f32 %v1079_v11  ;;  %v1083_v18 = vadd.f32 1.0, %v1082_v12  ;;  %vm1086_vm6 = vcmp.lt.f32.partialorder %v1085_v14, 0.0004427343 }
0x172c   :  { %v1084_v16 = vmul.f32 %v1430_v54, %v1083_v18 }
0x1734   :  { %v1432_v15 = vpop.eup %1431 }
0x1735   :  { %v1081_v6 = vmul.f32 0.6931472, %v1432_v15 }
0x1737   :  { %v1087_v0 = vsel %vm1086_vm6, %v1084_v16, %v1081_v6 }
0x1738   :  { %v1088_v9 = vadd.f32 %v1087_v0, %v1072_v1 }
0x173a   :  { %v1089_v17 = vsel %vm1073_vm7, %v1059_v59, %v1088_v9 }
0x173b   :  { %v1090_v19 = vadd.f32 1.0, %v1089_v17 }
0x173d   :  { %v1092_v20 = vsel %vm1091_vm8, %v1090_v19, 0.0 }
0x17a7   :  { %v1068_v21 = vpop.xlane.xlu1 %1067 }
0x17a8   :  { %v1069_v22 = vmax.f32 %v1068_v21, 1e-30 }
0x17aa   :  { %1433 = vrsqrt.f32 %v1069_v22 }
0x17b4   :  { %v1434_v23 = vpop.eup %1433 }
0x17b5   :  { %v1071_v24 = vmul.f32 %v1434_v23, %v1065_v4 }
0x17b7   :  { %v1093_v25 = vsel %vm1064_vm5, %v1071_v24, %v1092_v20 }
0x17b8   :  { %1094 = vst [vmem:[%s1719_s6] sm:$0xff] %v1093_v25 }
0x17b9   :  { %1099 = vsyncpa [#allocation4], 1 }

</bundles_post_ra>
